<compile_context>
chip_gen: v7x
topology: tpu7x:2x2x1
jax: 0.10.0
libtpu: 0.0.40
codegen_flags: <defaults>
</compile_context>

<pallas_src>
import jax
import jax.numpy as jnp
from jax import lax
from jax.experimental import pallas as pl
from jax.experimental.pallas import tpu as pltpu


def _round_up(x, m):
    return ((x + m - 1) // m) * m


def _vmem_budget_bytes():
    """Generation-aware VMEM staging budget (tighter cap on v7x's 64 MiB)."""
    try:
        cap = pltpu.get_tpu_info().vmem_capacity_bytes
    except Exception:
        cap = 64 * 1024 * 1024  # conservative fallback (v7x per-TensorCore)
    if cap <= 64 * 1024 * 1024:
        return 32 * 1024 * 1024  # v7x-class
    return 48 * 1024 * 1024      # v5e / v6e (128 MiB physical)


def _finish_scores(t_buf, c_buf, out_ref, bt, bc):
    """Zero pad rows, run the single MXU pass, fold in the feature score."""
    bt_pad, e = t_buf.shape
    bc_pad, _ = c_buf.shape

    # Deterministic padded output: zero the rows past the gathered data and the
    # folded feature row (costs at most a couple of vector stores).
    if bt + 1 < bt_pad:
        t_buf[bt + 1:, :] = jnp.zeros((bt_pad - bt - 1, e), t_buf.dtype)
    if bc + 1 < bc_pad:
        c_buf[bc + 1:, :] = jnp.zeros((bc_pad - bc - 1, e), c_buf.dtype)

    # A . B^T contraction. grid=(1,) => at most one transpose of c_buf, so the
    # "hoist the RHS transpose" concern only applies once Bt is grid-tiled.
    raw = lax.dot_general(
        t_buf[...], c_buf[...], (((1,), (1,)), ((), ())),
        preferred_element_type=jnp.float32)            # [bt_pad, bc_pad]

    # Feature rows were folded into rows bt / bc of the buffers, so the feature
    # score is raw[bt, bc] -- no extra VPU multiply or XLU reduction needed.
    feat_score = raw[bt:bt + 1, bc:bc + 1]              # [1, 1] f32
    out_ref[...] = (raw + feat_score).astype(out_ref.dtype)


# --------------------------------------------------------------------------
# Fast path: tables resident in VMEM (bulk-staged by BlockSpec), in-VMEM gather.
# --------------------------------------------------------------------------
def skipgram_vmem_kernel(tn_idx_ref, cn_idx_ref, feat_idx_ref,   # scalar prefetch
                         node_ref, feat_ref,                     # full tables (VMEM)
                         out_ref,                                # [bt_pad, bc_pad]
                         t_buf, c_buf):                          # VMEM gather scratch
    bt = tn_idx_ref.shape[0]
    bc = cn_idx_ref.shape[0]

    def gather(idx_ref, table_ref, dst_buf, count):
        def body(i, carry):
            dst_buf[pl.ds(i, 1), :] = table_ref[pl.ds(idx_ref[i], 1), :]
            return carry
        lax.fori_loop(0, count, body, 0, unroll=True)

    gather(tn_idx_ref, node_ref, t_buf, bt)
    gather(cn_idx_ref, node_ref, c_buf, bc)

    # Fold the two feature rows into the first padding row of each buffer.
    t_buf[bt:bt + 1, :] = feat_ref[pl.ds(feat_idx_ref[0], 1), :]
    c_buf[bc:bc + 1, :] = feat_ref[pl.ds(feat_idx_ref[1], 1), :]

    _finish_scores(t_buf, c_buf, out_ref, bt, bc)


# --------------------------------------------------------------------------
# Slow path: tables stay in HBM, per-row async gathers on 3 shared semaphores.
# --------------------------------------------------------------------------
def skipgram_hbm_kernel(tn_idx_ref, cn_idx_ref, feat_idx_ref,    # scalar prefetch
                        node_hbm_ref, feat_hbm_ref,              # tables (HBM)
                        out_ref,                                 # [bt_pad, bc_pad]
                        t_buf, c_buf,                            # VMEM gather scratch
                        t_sem, c_sem, f_sem):                    # 3 shared DMA sems
    bt = tn_idx_ref.shape[0]
    bc = cn_idx_ref.shape[0]

    def start_gathers(idx_ref, src_hbm, dst_buf, sem, count):
        def body(i, carry):
            pltpu.make_async_copy(
                src_hbm.at[pl.ds(idx_ref[i], 1), :],
                dst_buf.at[pl.ds(i, 1), :],
                sem.at[0]).start()
            return carry
        lax.fori_loop(0, count, body, 0, unroll=True)

    def wait_gathers(src_hbm, dst_buf, sem, count):
        # All copies on `sem` move the same 1-row byte count, so reconstructing
        # the descriptor with src row 0 is a valid wait; N starts -> N waits.
        def body(i, carry):
            pltpu.make_async_copy(
                src_hbm.at[pl.ds(0, 1), :],
                dst_buf.at[pl.ds(i, 1), :],
                sem.at[0]).wait()
            return carry
        lax.fori_loop(0, count, body, 0, unroll=True)

    # Issue every gather (targets, contexts, the 2 feature rows into the first
    # padding row of each buffer) before waiting on any.
    start_gathers(tn_idx_ref, node_hbm_ref, t_buf, t_sem, bt)
    start_gathers(cn_idx_ref, node_hbm_ref, c_buf, c_sem, bc)
    pltpu.make_async_copy(feat_hbm_ref.at[pl.ds(feat_idx_ref[0], 1), :],
                          t_buf.at[pl.ds(bt, 1), :], f_sem.at[0]).start()
    pltpu.make_async_copy(feat_hbm_ref.at[pl.ds(feat_idx_ref[1], 1), :],
                          c_buf.at[pl.ds(bc, 1), :], f_sem.at[0]).start()

    wait_gathers(node_hbm_ref, t_buf, t_sem, bt)
    wait_gathers(node_hbm_ref, c_buf, c_sem, bc)
    pltpu.make_async_copy(feat_hbm_ref.at[pl.ds(0, 1), :],
                          t_buf.at[pl.ds(bt, 1), :], f_sem.at[0]).wait()
    pltpu.make_async_copy(feat_hbm_ref.at[pl.ds(0, 1), :],
                          c_buf.at[pl.ds(bc, 1), :], f_sem.at[0]).wait()

    _finish_scores(t_buf, c_buf, out_ref, bt, bc)


# --------------------------------------------------------------------------
# Wrapper
# --------------------------------------------------------------------------
def skipgram_forward(node_emb, feat_emb, target_node, context_node,
                     target_feature, context_feature, *, force_hbm_gather=False):
    # torch.nonzero(vec)[0, 0] == index of first non-zero entry.
    # TODO(synk): torch.nonzero raises on an all-zero feature vector; argmax
    # silently returns 0 instead (no clean in-kernel equivalent of the raise).
    tf_idx = jnp.argmax(target_feature != 0).astype(jnp.int32)
    cf_idx = jnp.argmax(context_feature != 0).astype(jnp.int32)
    feat_idx = jnp.stack([tf_idx, cf_idx])

    bt = target_node.shape[0]
    bc = context_node.shape[0]
    n, e = node_emb.shape
    f, _ = feat_emb.shape

    # +1 spare row/column so the two feature rows ride in the padding and the
    # feature score comes out of the same MXU pass; Bc padded to a multiple of
    # 128 (lane-dense unmasked store), Bt to a multiple of 8 sublanes.
    bt_pad = _round_up(bt + 1, 8)
    bc_pad = _round_up(bc + 1, 128)

    itemsize = jnp.dtype(node_emb.dtype).itemsize
    # Tables may be double-buffered by the pipeline: count them twice.
    staged_bytes = 2 * (node_emb.size + feat_emb.size) * itemsize
    work_bytes = (bt_pad + bc_pad) * e * itemsize + 2 * bt_pad * bc_pad * 4
    budget = _vmem_budget_bytes()
    use_vmem_tables = (not force_hbm_gather) and (staged_bytes + work_bytes <= budget)

    if use_vmem_tables:
        kernel = skipgram_vmem_kernel
        grid_spec = pltpu.PrefetchScalarGridSpec(
            num_scalar_prefetch=3,
            grid=(1,),
            in_specs=[
                # Whole tables staged into VMEM with one bulk DMA each.
                pl.BlockSpec((n, e), lambda i, tn, cn, fi: (0, 0)),
                pl.BlockSpec((f, e), lambda i, tn, cn, fi: (0, 0)),
            ],
            out_specs=pl.BlockSpec((bt_pad, bc_pad), lambda i, tn, cn, fi: (0, 0)),
            scratch_shapes=[
                pltpu.VMEM((bt_pad, e), node_emb.dtype),   # gathered target rows
                pltpu.VMEM((bc_pad, e), node_emb.dtype),   # gathered context rows
            ],
        )
        vmem_limit = budget
    else:
        kernel = skipgram_hbm_kernel
        grid_spec = pltpu.PrefetchScalarGridSpec(
            num_scalar_prefetch=3,
            grid=(1,),
            in_specs=[
                pl.BlockSpec(memory_space=pl.ANY),   # node table stays in HBM
                pl.BlockSpec(memory_space=pl.ANY),   # feature table stays in HBM
            ],
            out_specs=pl.BlockSpec((bt_pad, bc_pad), lambda i, tn, cn, fi: (0, 0)),
            scratch_shapes=[
                pltpu.VMEM((bt_pad, e), node_emb.dtype),
                pltpu.VMEM((bc_pad, e), node_emb.dtype),
                pltpu.SemaphoreType.DMA((1,)),   # one shared sem per gather group
                pltpu.SemaphoreType.DMA((1,)),
                pltpu.SemaphoreType.DMA((1,)),
            ],
        )
        vmem_limit = 32 * 1024 * 1024

    out_padded = pl.pallas_call(
        kernel,
        out_shape=jax.ShapeDtypeStruct((bt_pad, bc_pad), jnp.float32),
        grid_spec=grid_spec,
        compiler_params=pltpu.CompilerParams(
            dimension_semantics=("arbitrary",),
            vmem_limit_bytes=vmem_limit),
    )(target_node.astype(jnp.int32), context_node.astype(jnp.int32), feat_idx,
      node_emb, feat_emb)
    return out_padded[:bt, :bc]


if __name__ == "__main__":
    num_nodes, num_features, emb_size = 256, 32, 128
    bt, bc = 8, 8

    key = jax.random.PRNGKey(0)
    k1, k2, k3, k4, k5, k6 = jax.random.split(key, 6)

    # Deterministic parameter init (nn.Embedding default: N(0, 1)).
    node_emb = jax.random.normal(k1, (num_nodes, emb_size), jnp.float32)
    feat_emb = jax.random.normal(k2, (num_features, emb_size), jnp.float32)

    # Example inputs.
    target_node = jax.random.randint(k3, (bt,), 0, num_nodes, jnp.int32)
    context_node = jax.random.randint(k4, (bc,), 0, num_nodes, jnp.int32)
    # Multi-hot feature indicator vectors (guaranteed at least one nonzero).
    target_feature = (jax.random.uniform(k5, (num_features,)) > 0.7).astype(jnp.float32)
    target_feature = target_feature.at[5].set(1.0)
    context_feature = (jax.random.uniform(k6, (num_features,)) > 0.7).astype(jnp.float32)
    context_feature = context_feature.at[3].set(1.0)

    # Fast path (whole tables staged in VMEM) — taken automatically at these sizes.
    out_fast = jax.block_until_ready(
        skipgram_forward(node_emb, feat_emb, target_node, context_node,
                         target_feature, context_feature))
    # Slow path (HBM per-row gathers, shared semaphores) — forced, to validate it.
    out_slow = jax.block_until_ready(
        skipgram_forward(node_emb, feat_emb, target_node, context_node,
                         target_feature, context_feature, force_hbm_gather=True))

    # Pure-JAX reference for correctness.
    tf_i = jnp.argmax(target_feature != 0)
    cf_i = jnp.argmax(context_feature != 0)
    ref = (node_emb[target_node] @ node_emb[context_node].T
           + jnp.sum(feat_emb[tf_i] * feat_emb[cf_i]))

    for out in (out_fast, out_slow):
        assert out.shape == (bt, bc) and out.dtype == jnp.float32
        rel_err = jnp.max(jnp.abs(out - ref)) / (jnp.max(jnp.abs(ref)) + 1e-6)
        assert rel_err < 1e-2, f"max relative error {rel_err}"

    print("KERNEL_OK")
</pallas_src>

<mosaic_0001>
module attributes {stable_mosaic.version = 11 : i64} {
  func.func @skipgram_vmem_kernel(%arg0: i32, %arg1: memref<8xi32, #tpu.memory_space<smem>>, %arg2: memref<8xi32, #tpu.memory_space<smem>>, %arg3: memref<2xi32, #tpu.memory_space<smem>>, %arg4: memref<256x128xf32, #tpu.memory_space<vmem>>, %arg5: memref<32x128xf32, #tpu.memory_space<vmem>>, %arg6: memref<16x128xf32, #tpu.memory_space<vmem>>, %arg7: memref<16x128xf32, #tpu.memory_space<vmem>>, %arg8: memref<128x128xf32, #tpu.memory_space<vmem>>) attributes {dimension_semantics = [#tpu.dimension_semantics<arbitrary>], iteration_bounds = array<i64: 1>, scalar_prefetch = 3 : i64, scratch_operands = 2 : i64, tpu.core_type = #tpu.core_type<tc>, window_params = [{pipeline_mode = #tpu.pipeline_mode<synchronous>, transform_indices = @transform_0, window_bounds = array<i64: 256, 128>}, {pipeline_mode = #tpu.pipeline_mode<synchronous>, transform_indices = @transform_1, window_bounds = array<i64: 32, 128>}, {pipeline_mode = #tpu.pipeline_mode<synchronous>, transform_indices = @transform_2, window_bounds = array<i64: 16, 128>}]} {
    %c0_i32 = arith.constant 0 : i32
    %0 = arith.index_cast %c0_i32 : i32 to index
    %1 = memref.load %arg1[%0] : memref<8xi32, #tpu.memory_space<smem>>
    %2 = arith.index_cast %1 : i32 to index
    %c0 = arith.constant 0 : index
    %3 = vector.load %arg4[%2, %c0] : memref<256x128xf32, #tpu.memory_space<vmem>>, vector<1x128xf32>
    %4 = arith.index_cast %c0_i32 : i32 to index
    %c0_0 = arith.constant 0 : index
    %5 = vector.load %arg7[%4, %c0_0] : memref<16x128xf32, #tpu.memory_space<vmem>>, vector<1x128xf32>
    tpu.vector_store %arg7[%4, %c0_0], %3 {strides = array<i32>} : memref<16x128xf32, #tpu.memory_space<vmem>>, vector<1x128xf32>,
    %c1_i32 = arith.constant 1 : i32
    %6 = arith.index_cast %c1_i32 : i32 to index
    %7 = memref.load %arg1[%6] : memref<8xi32, #tpu.memory_space<smem>>
    %8 = arith.index_cast %7 : i32 to index
    %c0_1 = arith.constant 0 : index
    %9 = vector.load %arg4[%8, %c0_1] : memref<256x128xf32, #tpu.memory_space<vmem>>, vector<1x128xf32>
    %10 = arith.index_cast %c1_i32 : i32 to index
    %c0_2 = arith.constant 0 : index
    %11 = vector.load %arg7[%10, %c0_2] : memref<16x128xf32, #tpu.memory_space<vmem>>, vector<1x128xf32>
    tpu.vector_store %arg7[%10, %c0_2], %9 {strides = array<i32>} : memref<16x128xf32, #tpu.memory_space<vmem>>, vector<1x128xf32>,
    %c2_i32 = arith.constant 2 : i32
    %12 = arith.index_cast %c2_i32 : i32 to index
    %13 = memref.load %arg1[%12] : memref<8xi32, #tpu.memory_space<smem>>
    %14 = arith.index_cast %13 : i32 to index
    %c0_3 = arith.constant 0 : index
    %15 = vector.load %arg4[%14, %c0_3] : memref<256x128xf32, #tpu.memory_space<vmem>>, vector<1x128xf32>
    %16 = arith.index_cast %c2_i32 : i32 to index
    %c0_4 = arith.constant 0 : index
    %17 = vector.load %arg7[%16, %c0_4] : memref<16x128xf32, #tpu.memory_space<vmem>>, vector<1x128xf32>
    tpu.vector_store %arg7[%16, %c0_4], %15 {strides = array<i32>} : memref<16x128xf32, #tpu.memory_space<vmem>>, vector<1x128xf32>,
    %c3_i32 = arith.constant 3 : i32
    %18 = arith.index_cast %c3_i32 : i32 to index
    %19 = memref.load %arg1[%18] : memref<8xi32, #tpu.memory_space<smem>>
    %20 = arith.index_cast %19 : i32 to index
    %c0_5 = arith.constant 0 : index
    %21 = vector.load %arg4[%20, %c0_5] : memref<256x128xf32, #tpu.memory_space<vmem>>, vector<1x128xf32>
    %22 = arith.index_cast %c3_i32 : i32 to index
    %c0_6 = arith.constant 0 : index
    %23 = vector.load %arg7[%22, %c0_6] : memref<16x128xf32, #tpu.memory_space<vmem>>, vector<1x128xf32>
    tpu.vector_store %arg7[%22, %c0_6], %21 {strides = array<i32>} : memref<16x128xf32, #tpu.memory_space<vmem>>, vector<1x128xf32>,
    %c4_i32 = arith.constant 4 : i32
    %24 = arith.index_cast %c4_i32 : i32 to index
    %25 = memref.load %arg1[%24] : memref<8xi32, #tpu.memory_space<smem>>
    %26 = arith.index_cast %25 : i32 to index
    %c0_7 = arith.constant 0 : index
    %27 = vector.load %arg4[%26, %c0_7] : memref<256x128xf32, #tpu.memory_space<vmem>>, vector<1x128xf32>
    %28 = arith.index_cast %c4_i32 : i32 to index
    %c0_8 = arith.constant 0 : index
    %29 = vector.load %arg7[%28, %c0_8] : memref<16x128xf32, #tpu.memory_space<vmem>>, vector<1x128xf32>
    tpu.vector_store %arg7[%28, %c0_8], %27 {strides = array<i32>} : memref<16x128xf32, #tpu.memory_space<vmem>>, vector<1x128xf32>,
    %c5_i32 = arith.constant 5 : i32
    %30 = arith.index_cast %c5_i32 : i32 to index
    %31 = memref.load %arg1[%30] : memref<8xi32, #tpu.memory_space<smem>>
    %32 = arith.index_cast %31 : i32 to index
    %c0_9 = arith.constant 0 : index
    %33 = vector.load %arg4[%32, %c0_9] : memref<256x128xf32, #tpu.memory_space<vmem>>, vector<1x128xf32>
    %34 = arith.index_cast %c5_i32 : i32 to index
    %c0_10 = arith.constant 0 : index
    %35 = vector.load %arg7[%34, %c0_10] : memref<16x128xf32, #tpu.memory_space<vmem>>, vector<1x128xf32>
    tpu.vector_store %arg7[%34, %c0_10], %33 {strides = array<i32>} : memref<16x128xf32, #tpu.memory_space<vmem>>, vector<1x128xf32>,
    %c6_i32 = arith.constant 6 : i32
    %36 = arith.index_cast %c6_i32 : i32 to index
    %37 = memref.load %arg1[%36] : memref<8xi32, #tpu.memory_space<smem>>
    %38 = arith.index_cast %37 : i32 to index
    %c0_11 = arith.constant 0 : index
    %39 = vector.load %arg4[%38, %c0_11] : memref<256x128xf32, #tpu.memory_space<vmem>>, vector<1x128xf32>
    %40 = arith.index_cast %c6_i32 : i32 to index
    %c0_12 = arith.constant 0 : index
    %41 = vector.load %arg7[%40, %c0_12] : memref<16x128xf32, #tpu.memory_space<vmem>>, vector<1x128xf32>
    tpu.vector_store %arg7[%40, %c0_12], %39 {strides = array<i32>} : memref<16x128xf32, #tpu.memory_space<vmem>>, vector<1x128xf32>,
    %c7_i32 = arith.constant 7 : i32
    %42 = arith.index_cast %c7_i32 : i32 to index
    %43 = memref.load %arg1[%42] : memref<8xi32, #tpu.memory_space<smem>>
    %44 = arith.index_cast %43 : i32 to index
    %c0_13 = arith.constant 0 : index
    %45 = vector.load %arg4[%44, %c0_13] : memref<256x128xf32, #tpu.memory_space<vmem>>, vector<1x128xf32>
    %46 = arith.index_cast %c7_i32 : i32 to index
    %c0_14 = arith.constant 0 : index
    %47 = vector.load %arg7[%46, %c0_14] : memref<16x128xf32, #tpu.memory_space<vmem>>, vector<1x128xf32>
    tpu.vector_store %arg7[%46, %c0_14], %45 {strides = array<i32>} : memref<16x128xf32, #tpu.memory_space<vmem>>, vector<1x128xf32>,
    %c8_i32 = arith.constant 8 : i32
    %c0_i32_15 = arith.constant 0 : i32
    %48 = arith.index_cast %c0_i32_15 : i32 to index
    %49 = memref.load %arg2[%48] : memref<8xi32, #tpu.memory_space<smem>>
    %50 = arith.index_cast %49 : i32 to index
    %c0_16 = arith.constant 0 : index
    %51 = vector.load %arg4[%50, %c0_16] : memref<256x128xf32, #tpu.memory_space<vmem>>, vector<1x128xf32>
    %52 = arith.index_cast %c0_i32_15 : i32 to index
    %c0_17 = arith.constant 0 : index
    %53 = vector.load %arg8[%52, %c0_17] : memref<128x128xf32, #tpu.memory_space<vmem>>, vector<1x128xf32>
    tpu.vector_store %arg8[%52, %c0_17], %51 {strides = array<i32>} : memref<128x128xf32, #tpu.memory_space<vmem>>, vector<1x128xf32>,
    %c1_i32_18 = arith.constant 1 : i32
    %54 = arith.index_cast %c1_i32_18 : i32 to index
    %55 = memref.load %arg2[%54] : memref<8xi32, #tpu.memory_space<smem>>
    %56 = arith.index_cast %55 : i32 to index
    %c0_19 = arith.constant 0 : index
    %57 = vector.load %arg4[%56, %c0_19] : memref<256x128xf32, #tpu.memory_space<vmem>>, vector<1x128xf32>
    %58 = arith.index_cast %c1_i32_18 : i32 to index
    %c0_20 = arith.constant 0 : index
    %59 = vector.load %arg8[%58, %c0_20] : memref<128x128xf32, #tpu.memory_space<vmem>>, vector<1x128xf32>
    tpu.vector_store %arg8[%58, %c0_20], %57 {strides = array<i32>} : memref<128x128xf32, #tpu.memory_space<vmem>>, vector<1x128xf32>,
    %c2_i32_21 = arith.constant 2 : i32
    %60 = arith.index_cast %c2_i32_21 : i32 to index
    %61 = memref.load %arg2[%60] : memref<8xi32, #tpu.memory_space<smem>>
    %62 = arith.index_cast %61 : i32 to index
    %c0_22 = arith.constant 0 : index
    %63 = vector.load %arg4[%62, %c0_22] : memref<256x128xf32, #tpu.memory_space<vmem>>, vector<1x128xf32>
    %64 = arith.index_cast %c2_i32_21 : i32 to index
    %c0_23 = arith.constant 0 : index
    %65 = vector.load %arg8[%64, %c0_23] : memref<128x128xf32, #tpu.memory_space<vmem>>, vector<1x128xf32>
    tpu.vector_store %arg8[%64, %c0_23], %63 {strides = array<i32>} : memref<128x128xf32, #tpu.memory_space<vmem>>, vector<1x128xf32>,
    %c3_i32_24 = arith.constant 3 : i32
    %66 = arith.index_cast %c3_i32_24 : i32 to index
    %67 = memref.load %arg2[%66] : memref<8xi32, #tpu.memory_space<smem>>
    %68 = arith.index_cast %67 : i32 to index
    %c0_25 = arith.constant 0 : index
    %69 = vector.load %arg4[%68, %c0_25] : memref<256x128xf32, #tpu.memory_space<vmem>>, vector<1x128xf32>
    %70 = arith.index_cast %c3_i32_24 : i32 to index
    %c0_26 = arith.constant 0 : index
    %71 = vector.load %arg8[%70, %c0_26] : memref<128x128xf32, #tpu.memory_space<vmem>>, vector<1x128xf32>
    tpu.vector_store %arg8[%70, %c0_26], %69 {strides = array<i32>} : memref<128x128xf32, #tpu.memory_space<vmem>>, vector<1x128xf32>,
    %c4_i32_27 = arith.constant 4 : i32
    %72 = arith.index_cast %c4_i32_27 : i32 to index
    %73 = memref.load %arg2[%72] : memref<8xi32, #tpu.memory_space<smem>>
    %74 = arith.index_cast %73 : i32 to index
    %c0_28 = arith.constant 0 : index
    %75 = vector.load %arg4[%74, %c0_28] : memref<256x128xf32, #tpu.memory_space<vmem>>, vector<1x128xf32>
    %76 = arith.index_cast %c4_i32_27 : i32 to index
    %c0_29 = arith.constant 0 : index
    %77 = vector.load %arg8[%76, %c0_29] : memref<128x128xf32, #tpu.memory_space<vmem>>, vector<1x128xf32>
    tpu.vector_store %arg8[%76, %c0_29], %75 {strides = array<i32>} : memref<128x128xf32, #tpu.memory_space<vmem>>, vector<1x128xf32>,
    %c5_i32_30 = arith.constant 5 : i32
    %78 = arith.index_cast %c5_i32_30 : i32 to index
    %79 = memref.load %arg2[%78] : memref<8xi32, #tpu.memory_space<smem>>
    %80 = arith.index_cast %79 : i32 to index
    %c0_31 = arith.constant 0 : index
    %81 = vector.load %arg4[%80, %c0_31] : memref<256x128xf32, #tpu.memory_space<vmem>>, vector<1x128xf32>
    %82 = arith.index_cast %c5_i32_30 : i32 to index
    %c0_32 = arith.constant 0 : index
    %83 = vector.load %arg8[%82, %c0_32] : memref<128x128xf32, #tpu.memory_space<vmem>>, vector<1x128xf32>
    tpu.vector_store %arg8[%82, %c0_32], %81 {strides = array<i32>} : memref<128x128xf32, #tpu.memory_space<vmem>>, vector<1x128xf32>,
    %c6_i32_33 = arith.constant 6 : i32
    %84 = arith.index_cast %c6_i32_33 : i32 to index
    %85 = memref.load %arg2[%84] : memref<8xi32, #tpu.memory_space<smem>>
    %86 = arith.index_cast %85 : i32 to index
    %c0_34 = arith.constant 0 : index
    %87 = vector.load %arg4[%86, %c0_34] : memref<256x128xf32, #tpu.memory_space<vmem>>, vector<1x128xf32>
    %88 = arith.index_cast %c6_i32_33 : i32 to index
    %c0_35 = arith.constant 0 : index
    %89 = vector.load %arg8[%88, %c0_35] : memref<128x128xf32, #tpu.memory_space<vmem>>, vector<1x128xf32>
    tpu.vector_store %arg8[%88, %c0_35], %87 {strides = array<i32>} : memref<128x128xf32, #tpu.memory_space<vmem>>, vector<1x128xf32>,
    %c7_i32_36 = arith.constant 7 : i32
    %90 = arith.index_cast %c7_i32_36 : i32 to index
    %91 = memref.load %arg2[%90] : memref<8xi32, #tpu.memory_space<smem>>
    %92 = arith.index_cast %91 : i32 to index
    %c0_37 = arith.constant 0 : index
    %93 = vector.load %arg4[%92, %c0_37] : memref<256x128xf32, #tpu.memory_space<vmem>>, vector<1x128xf32>
    %94 = arith.index_cast %c7_i32_36 : i32 to index
    %c0_38 = arith.constant 0 : index
    %95 = vector.load %arg8[%94, %c0_38] : memref<128x128xf32, #tpu.memory_space<vmem>>, vector<1x128xf32>
    tpu.vector_store %arg8[%94, %c0_38], %93 {strides = array<i32>} : memref<128x128xf32, #tpu.memory_space<vmem>>, vector<1x128xf32>,
    %c8_i32_39 = arith.constant 8 : i32
    %c0_40 = arith.constant 0 : index
    %96 = memref.load %arg3[%c0_40] : memref<2xi32, #tpu.memory_space<smem>>
    %97 = arith.index_cast %96 : i32 to index
    %c0_41 = arith.constant 0 : index
    %98 = vector.load %arg5[%97, %c0_41] : memref<32x128xf32, #tpu.memory_space<vmem>>, vector<1x128xf32>
    %c8 = arith.constant 8 : index
    %c0_42 = arith.constant 0 : index
    %99 = vector.load %arg7[%c8, %c0_42] : memref<16x128xf32, #tpu.memory_space<vmem>>, vector<1x128xf32>
    tpu.vector_store %arg7[%c8, %c0_42], %98 {strides = array<i32>} : memref<16x128xf32, #tpu.memory_space<vmem>>, vector<1x128xf32>,
    %c1 = arith.constant 1 : index
    %100 = memref.load %arg3[%c1] : memref<2xi32, #tpu.memory_space<smem>>
    %101 = arith.index_cast %100 : i32 to index
    %c0_43 = arith.constant 0 : index
    %102 = vector.load %arg5[%101, %c0_43] : memref<32x128xf32, #tpu.memory_space<vmem>>, vector<1x128xf32>
    %c8_44 = arith.constant 8 : index
    %c0_45 = arith.constant 0 : index
    %103 = vector.load %arg8[%c8_44, %c0_45] : memref<128x128xf32, #tpu.memory_space<vmem>>, vector<1x128xf32>
    tpu.vector_store %arg8[%c8_44, %c0_45], %102 {strides = array<i32>} : memref<128x128xf32, #tpu.memory_space<vmem>>, vector<1x128xf32>,
    %cst = arith.constant 0.000000e+00 : f32
    %104 = vector.broadcast %cst : f32 to vector<7x128xf32>
    %c9 = arith.constant 9 : index
    %c0_46 = arith.constant 0 : index
    %105 = vector.load %arg7[%c9, %c0_46] : memref<16x128xf32, #tpu.memory_space<vmem>>, vector<7x128xf32>
    tpu.vector_store %arg7[%c9, %c0_46], %104 {strides = array<i32>} : memref<16x128xf32, #tpu.memory_space<vmem>>, vector<7x128xf32>,
    %cst_47 = arith.constant 0.000000e+00 : f32
    %106 = vector.broadcast %cst_47 : f32 to vector<119x128xf32>
    %c9_48 = arith.constant 9 : index
    %c0_49 = arith.constant 0 : index
    %107 = vector.load %arg8[%c9_48, %c0_49] : memref<128x128xf32, #tpu.memory_space<vmem>>, vector<119x128xf32>
    tpu.vector_store %arg8[%c9_48, %c0_49], %106 {strides = array<i32>} : memref<128x128xf32, #tpu.memory_space<vmem>>, vector<119x128xf32>,
    %c0_50 = arith.constant 0 : index
    %c0_51 = arith.constant 0 : index
    %108 = vector.load %arg7[%c0_50, %c0_51] : memref<16x128xf32, #tpu.memory_space<vmem>>, vector<16x128xf32>
    %c0_52 = arith.constant 0 : index
    %c0_53 = arith.constant 0 : index
    %109 = vector.load %arg8[%c0_52, %c0_53] : memref<128x128xf32, #tpu.memory_space<vmem>>, vector<128x128xf32>
    %cst_54 = arith.constant dense<0.000000e+00> : vector<16x128xf32>
    %110 = tpu.matmul %108, %109, %cst_54 {dimension_numbers = #tpu.dot_dimension_numbers<[1], [1], [0], [0], [0, 0, 1, 0], [], []>} : vector<16x128xf32>, vector<128x128xf32>, vector<16x128xf32> -> vector<16x128xf32>
    %111 = vector.extract_strided_slice %110 {offsets = [8, 8], sizes = [1, 1], strides = [1, 1]} : vector<16x128xf32> to vector<1x1xf32>
    %112 = vector.broadcast %111 : vector<1x1xf32> to vector<16x128xf32>
    %113 = arith.addf %110, %112 : vector<16x128xf32>
    %c0_55 = arith.constant 0 : index
    %c0_56 = arith.constant 0 : index
    %114 = vector.load %arg6[%c0_55, %c0_56] : memref<16x128xf32, #tpu.memory_space<vmem>>, vector<16x128xf32>
    tpu.vector_store %arg6[%c0_55, %c0_56], %113 {strides = array<i32>} : memref<16x128xf32, #tpu.memory_space<vmem>>, vector<16x128xf32>,
    return
  }
  func.func @transform_0(%arg0: i32, %arg1: memref<8xi32, #tpu.memory_space<smem>>, %arg2: memref<8xi32, #tpu.memory_space<smem>>, %arg3: memref<2xi32, #tpu.memory_space<smem>>) -> (i32, i32) {
    %c0_i32 = arith.constant 0 : i32
    %c0_i32_0 = arith.constant 0 : i32
    %c0_i32_1 = arith.constant 0 : i32
    return %c0_i32, %c0_i32_0 : i32, i32
  }
  func.func @transform_1(%arg0: i32, %arg1: memref<8xi32, #tpu.memory_space<smem>>, %arg2: memref<8xi32, #tpu.memory_space<smem>>, %arg3: memref<2xi32, #tpu.memory_space<smem>>) -> (i32, i32) {
    %c0_i32 = arith.constant 0 : i32
    %c0_i32_0 = arith.constant 0 : i32
    %c0_i32_1 = arith.constant 0 : i32
    return %c0_i32, %c0_i32_0 : i32, i32
  }
  func.func @transform_2(%arg0: i32, %arg1: memref<8xi32, #tpu.memory_space<smem>>, %arg2: memref<8xi32, #tpu.memory_space<smem>>, %arg3: memref<2xi32, #tpu.memory_space<smem>>) -> (i32, i32) {
    %c0_i32 = arith.constant 0 : i32
    %c0_i32_0 = arith.constant 0 : i32
    %c0_i32_1 = arith.constant 0 : i32
    return %c0_i32, %c0_i32_0 : i32, i32
  }
}

</mosaic_0001>

<bundles_post_ra>
// kernel: tpu_custom_call.1
= control target key start
LH: loop header
LB: loop body
LE: loop exit
PB: predicated region body
PF: predicated region fallthrough
CT: control target
= control target key end

     0   :  { %s623_s0 = inlined_call_operand.hbm [shape: s32[8], index: 0, kind: input, shape index: {}]   ;;  %s624_s3 = inlined_call_operand.hbm [shape: f32[256,128], index: 3, kind: input, shape index: {}]   ;;  %s625_s4 = inlined_call_operand.hbm [shape: f32[32,128], index: 4, kind: input, shape index: {}]   ;;  %s626_s5 = inlined_call_operand.hbm [shape: f32[16,128], index: 5, kind: output, shape index: {}]   ;;  %s627_s1 = inlined_call_operand.vmem [shape: s32[8], index: 1, kind: input, shape index: {}]   ;;  %s628_s2 = inlined_call_operand.vmem [shape: s32[2], index: 2, kind: input, shape index: {}]  }
   0x1   :  { %s394_s20 = scalar_lea.hbm %s623_s0, 16 }
   0x2   :  { %p395_p0 = scmp.ne.s32.totalorder %s623_s0, %s394_s20  ;;  %p398_p1 = scmp.lt.u32.totalorder %s394_s20, %s623_s0 }
   0x4   :  { %p400_p2 = pnand %p398_p1, %p395_p0 }
   0x6   :  { %403 = shalt.err (!%p400_p2)  }
   0x7   :  { %s502_s25 = smov [#allocation5]   ;;  %s12_s30 = sshll.u32 %s627_s1, 4  ;;  %s13_s30 = int_to_ptr.vmem [resolvable:$true] %s12_s30 }
   0x8   :  { %11 = dma.hbm_to_smem %s623_s0, 16, %s502_s25, [#allocation4] }
   0x9   :  { %s16_s8 = sshll.u32 %s628_s2, 4  ;;  %s404_s9 = scalar_lea.vmem %s13_s30, 16  ;;  %s17_s8 = int_to_ptr.vmem [resolvable:$true] %s16_s8 }
   0xa   :  { %p405_p3 = scmp.ne.s32.totalorder %s13_s30, %s404_s9  ;;  %p409_p4 = scmp.lt.s32.totalorder %s13_s30, %s13_s30 }
   0xb   :  { %p410_p5 = scmp.lt.s32.totalorder %s404_s9, %s404_s9 }
   0xd   :  { %p411_p6 = por %p410_p5, %p409_p4 }
   0xf   :  { %p412_p7 = pnand %p411_p6, %p405_p3 }
  0x11   :  { %415 = shalt.err (!%p412_p7)  }
  0x12   :  { %s503_s10 = smov [#allocation6]   ;;  %s416_s0 = scalar_lea.vmem %s17_s8, 16 }
  0x13   :  { %15 = dma.vmem_to_smem %s13_s30, 16, %s503_s10, [#allocation4] }
  0x14   :  { %p417_p8 = scmp.ne.s32.totalorder %s17_s8, %s416_s0  ;;  %p421_p9 = scmp.lt.s32.totalorder %s17_s8, %s17_s8 }
  0x15   :  { %p422_p10 = scmp.lt.s32.totalorder %s416_s0, %s416_s0 }
  0x17   :  { %p423_p11 = por %p422_p10, %p421_p9 }
  0x19   :  { %p424_p12 = pnand %p423_p11, %p417_p8 }
  0x1b   :  { %427 = shalt.err (!%p424_p12)  }
  0x1c   :  { %s504_s1 = smov [#allocation7]  }
  0x1d   :  { %19 = dma.vmem_to_smem %s17_s8, 16, %s504_s1, [#allocation4] }
  0x1e   :  { %494 = dma.done.wait [#allocation4], 48 }
  0x1f   :  { %495 = vsyncadd [#allocation4], 4294967248 }
  0x20   :  { %21 = sfence }
  0x21   :  { %22 = vsyncpa [#allocation9], 0 }
  0x22   :  { %23 = vsyncpa [#allocation12], 0 }
  0x23   :  { %24 = vsyncpa [#allocation10], 0  ;;  %s505_s2 = smov [#allocation8]   ;;  %s428_s14 = scalar_lea.hbm %s624_s3, 4096 }
  0x24   :  { %s30_s11 = sshll.u32 %s505_s2, 4  ;;  %p429_p13 = scmp.ne.s32.totalorder %s624_s3, %s428_s14  ;;  %s31_s11 = int_to_ptr.vmem [resolvable:$true] %s30_s11 }
  0x25   :  { %p432_p0 = scmp.lt.u32.totalorder %s428_s14, %s624_s3 }
  0x27   :  { %p434_p1 = pnand %p432_p0, %p429_p13 }
  0x29   :  { %437 = shalt.err (!%p434_p1)
}
  0x2a   :  { %s438_s19 = scalar_lea.vmem %s31_s11, 4096  ;;  %p443_p3 = scmp.lt.s32.totalorder %s31_s11, %s31_s11 }
  0x2b   :  { %p439_p2 = scmp.ne.s32.totalorder %s31_s11, %s438_s19  ;;  %p444_p4 = scmp.lt.s32.totalorder %s438_s19, %s438_s19 }
  0x2d   :  { %p445_p5 = por %p444_p4, %p443_p3 }
  0x2f   :  { %p446_p6 = pnand %p445_p5, %p439_p2 }
  0x31   :  { %449 = shalt.err (!%p446_p6)
}
  0x32   :  { %s506_s20 = smov 128   ;;  %s507_s21 = smov 8  }
  0x33   :  { %36 = dma.hbm_to_vmem [thread:$0]  %s624_s3, 4096, %s31_s11, [#allocation9], %s506_s20, %s506_s20, %s507_s21  }
  0x34   :  { %s508_s24 = smov [#allocation11]   ;;  %s450_s28 = scalar_lea.hbm %s625_s4, 512 }
  0x35   :  { %s42_s25 = sshll.u32 %s508_s24, 4  ;;  %p451_p7 = scmp.ne.s32.totalorder %s625_s4, %s450_s28  ;;  %s43_s25 = int_to_ptr.vmem [resolvable:$true] %s42_s25 }
  0x36   :  { %p454_p8 = scmp.lt.u32.totalorder %s450_s28, %s625_s4 }
  0x38   :  { %p456_p9 = pnand %p454_p8, %p451_p7 }
  0x3a   :  { %459 = shalt.err (!%p456_p9)
}
  0x3b   :  { %s460_s8 = scalar_lea.vmem %s43_s25, 512  ;;  %p465_p11 = scmp.lt.s32.totalorder %s43_s25, %s43_s25 }
  0x3c   :  { %p461_p10 = scmp.ne.s32.totalorder %s43_s25, %s460_s8  ;;  %p466_p12 = scmp.lt.s32.totalorder %s460_s8, %s460_s8 }
  0x3e   :  { %p467_p13 = por %p466_p12, %p465_p11 }
  0x40   :  { %p468_p0 = pnand %p467_p13, %p461_p10 }
  0x42   :  { %471 = shalt.err (!%p468_p0)
}
  0x43   :  { %48 = dma.hbm_to_vmem [thread:$0]  %s625_s4, 512, %s43_s25, [#allocation12], %s506_s20, %s506_s20, %s507_s21  }
  0x44   :  { %496 = dma.done.wait [#allocation9], 4096  }
  0x45   :  { %497 = vsyncadd [#allocation9], 4294963200 }
  0x46   :  { %498 = dma.done.wait [#allocation12], 512  }
  0x47   :  { %499 = vsyncadd [#allocation12], 4294966784  ;;  %s590_s10 = sld [smem:[#allocation6]]  ;;  %s592_s0 = sld [smem:[#allocation6 + $0x1]]  ;;  %v509_v0 = vmov 0.0  }
  0x48   :  { %128 = vst [vmem:[#allocation3 + $0x9] sm:$0xff] %v509_v0  ;;  %127 = vst [vmem:[#allocation2 + $0x9] sm:$0x7f] %v509_v0  ;;  %s290_s4 = sld [smem:[#allocation6 + $0x2]]  ;;  %s291_s1 = sld [smem:[#allocation6 + $0x3]] }
  0x49   :  { %129 = vst [vmem:[#allocation3 + $0x11] sm:$0xff] %v509_v0  ;;  %130 = vst [vmem:[#allocation3 + $0x19] sm:$0xff] %v509_v0  ;;  %s292_s2 = sld [smem:[#allocation6 + $0x4]]  ;;  %s293_s11 = sld [smem:[#allocation6 + $0x5]] }
  0x4a   :  { %131 = vst [vmem:[#allocation3 + $0x21] sm:$0xff] %v509_v0  ;;  %132 = vst [vmem:[#allocation3 + $0x29] sm:$0xff] %v509_v0  ;;  %s294_s12 = sld [smem:[#allocation6 + $0x6]]  ;;  %s295_s13 = sld [smem:[#allocation6 + $0x7]] }
  0x4b   :  { %133 = vst [vmem:[#allocation3 + $0x31] sm:$0xff] %v509_v0  ;;  %134 = vst [vmem:[#allocation3 + $0x39] sm:$0xff] %v509_v0  ;;  %s594_s14 = sld [smem:[#allocation7 + $0x1]]  ;;  %s596_s15 = sld [smem:[#allocation5]] }
  0x4c   :  { %135 = vst [vmem:[#allocation3 + $0x41] sm:$0xff] %v509_v0  ;;  %136 = vst [vmem:[#allocation3 + $0x49] sm:$0xff] %v509_v0  ;;  %s598_s16 = sld [smem:[#allocation5 + $0x1]]  ;;  %s600_s17 = sld [smem:[#allocation5 + $0x2]] }
  0x4d   :  { %137 = vst [vmem:[#allocation3 + $0x51] sm:$0xff] %v509_v0  ;;  %138 = vst [vmem:[#allocation3 + $0x59] sm:$0xff] %v509_v0  ;;  %s88_s18 = scalar_lea.vmem [#allocation8], %s590_s10  ;;  %s92_s19 = scalar_lea.vmem [#allocation8], %s592_s0 }
  0x4e   :  { %139 = vst [vmem:[#allocation3 + $0x61] sm:$0xff] %v509_v0  ;;  %140 = vst [vmem:[#allocation3 + $0x69] sm:$0xff] %v509_v0  ;;  %v89_v1 = vld [vmem:[%s88_s18] sm:$0x1]  ;;  %s96_s22 = scalar_lea.vmem [#allocation8], %s290_s4  ;;  %s100_s23 = scalar_lea.vmem [#allocation8], %s291_s1 }
  0x4f   :  { %141 = vst [vmem:[#allocation3 + $0x71] sm:$0xff] %v509_v0  ;;  %142 = vst [vmem:[#allocation3 + $0x79] sm:$0x7f] %v509_v0  ;;  %v93_v2 = vld [vmem:[%s92_s19] sm:$0x1]  ;;  %s104_s24 = scalar_lea.vmem [#allocation8], %s292_s2 }
  0x50   :  { %90 = vst [vmem:[#allocation3] sm:$0x1] %v89_v1  ;;  %94 = vst [vmem:[#allocation3 + $0x1] sm:$0x1] %v93_v2  ;;  %v97_v3 = vld [vmem:[%s96_s22] sm:$0x1] }
  0x51   :  { %v101_v4 = vld [vmem:[%s100_s23] sm:$0x1]  ;;  %98 = vst [vmem:[#allocation3 + $0x2] sm:$0x1] %v97_v3  ;;  %s108_s25 = scalar_lea.vmem [#allocation8], %s293_s11  ;;  %s112_s26 = scalar_lea.vmem [#allocation8], %s294_s12 }
  0x52   :  { %102 = vst [vmem:[#allocation3 + $0x3] sm:$0x1] %v101_v4  ;;  %v105_v5 = vld [vmem:[%s104_s24] sm:$0x1]  ;;  %s116_s27 = scalar_lea.vmem [#allocation8], %s295_s13  ;;  %s124_s28 = scalar_lea.vmem [#allocation11], %s594_s14 }
  0x53   :  { %v109_v6 = vld [vmem:[%s108_s25] sm:$0x1]  ;;  %106 = vst [vmem:[#allocation3 + $0x4] sm:$0x1] %v105_v5  ;;  %s284_s29 = sld [smem:[#allocation5 + $0x3]]  ;;  %s285_s30 = sld [smem:[#allocation5 + $0x4]] }
  0x54   :  { %110 = vst [vmem:[#allocation3 + $0x5] sm:$0x1] %v109_v6  ;;  %v113_v7 = vld [vmem:[%s112_s26] sm:$0x1]  ;;  %s286_s6 = sld [smem:[#allocation5 + $0x5]]  ;;  %s56_s7 = scalar_lea.vmem [#allocation8], %s596_s15 }
  0x55   :  { %v117_v8 = vld [vmem:[%s116_s27] sm:$0x1]  ;;  %114 = vst [vmem:[#allocation3 + $0x6] sm:$0x1] %v113_v7  ;;  %s287_s8 = sld [smem:[#allocation5 + $0x6]]  ;;  %s60_s3 = scalar_lea.vmem [#allocation8], %s598_s16 }
  0x56   :  { %118 = vst [vmem:[#allocation3 + $0x7] sm:$0x1] %v117_v8  ;;  %v125_v9 = vld [vmem:[%s124_s28] sm:$0x1]  ;;  %s64_s9 = scalar_lea.vmem [#allocation8], %s600_s17  ;;  %s288_s10 = sld [smem:[#allocation5 + $0x7]] }
  0x57   :  { %126 = vst [vmem:[#allocation3 + $0x8] sm:$0x1] %v125_v9  ;;  %v57_v10 = vld [vmem:[%s56_s7] sm:$0x1]  ;;  %v148_v14 = vld [vmem:[#allocation3 + $0x18] sm:$0xff]  ;;  %s119_s0 = sld [smem:[#allocation7]] }
  0x58   :  { %58 = vst [vmem:[#allocation2] sm:$0x1] %v57_v10  ;;  %v61_v11 = vld [vmem:[%s60_s3] sm:$0x1]  ;;  %v149_v25 = vld [vmem:[#allocation3 + $0x20] sm:$0xff]  ;;  %v150_v26 = vld [vmem:[#allocation3 + $0x28] sm:$0xff] }
  0x59   :  { %v65_v12 = vld [vmem:[%s64_s9] sm:$0x1]  ;;  %62 = vst [vmem:[#allocation2 + $0x1] sm:$0x1] %v61_v11  ;;  %s68_s4 = scalar_lea.vmem [#allocation8], %s284_s29  ;;  %s72_s1 = scalar_lea.vmem [#allocation8], %s285_s30  ;;  %v358_v27 = vpack.c.bf16 %v150_v26, %v149_v25 }
  0x5a   :  { %v147_v13 = vld [vmem:[#allocation3 + $0x10] sm:$0xff]  ;;  %66 = vst [vmem:[#allocation2 + $0x2] sm:$0x1] %v65_v12  ;;  %s76_s2 = scalar_lea.vmem [#allocation8], %s286_s6  ;;  %v152_v30 = vld [vmem:[#allocation3 + $0x38] sm:$0xff]  ;;  %v153_v32 = vld [vmem:[#allocation3 + $0x40] sm:$0xff] }
  0x5b   :  { %v69_v17 = vld [vmem:[%s68_s4] sm:$0x1]  ;;  %v354_v19 = vpack.c.bf16 %v148_v14, %v147_v13  ;;  %s80_s11 = scalar_lea.vmem [#allocation8], %s287_s8  ;;  %v154_v33 = vld [vmem:[#allocation3 + $0x48] sm:$0xff]  ;;  %v156_v36 = vld [vmem:[#allocation3 + $0x58] sm:$0xff]  ;;  %s510_s14 = smov 120  }
  0x5c   :  { %70 = vst [vmem:[#allocation2 + $0x3] sm:$0x1] %v69_v17  ;;  %v73_v20 = vld [vmem:[%s72_s1] sm:$0x1]  ;;  %s84_s12 = scalar_lea.vmem [#allocation8], %s288_s10  ;;  %v366_v34 = vpack.c.bf16 %v154_v33, %v153_v32  ;;  %v157_v38 = vld [vmem:[#allocation3 + $0x60] sm:$0xff] }
  0x5d   :  { %v145_v15 = vld [vmem:[#allocation3] sm:$0xff]  ;;  %74 = vst [vmem:[#allocation2 + $0x4] sm:$0x1] %v73_v20  ;;  %v77_v21 = vld [vmem:[%s76_s2] sm:$0x1]  ;;  %s120_s13 = scalar_lea.vmem [#allocation11], %s119_s0 }
  0x5e   :  { %v146_v16 = vld [vmem:[#allocation3 + $0x8] sm:$0xff]  ;;  %78 = vst [vmem:[#allocation2 + $0x5] sm:$0x1] %v77_v21  ;;  %v81_v22 = vld [vmem:[%s80_s11] sm:$0x1]  ;;  %v160_v42 = vld [vmem:[#allocation3 + $0x78] sm:$0xff] }
  0x5f   :  { %v350_v18 = vpack.c.bf16 %v146_v16, %v145_v15  ;;  %82 = vst [vmem:[#allocation2 + $0x6] sm:$0x1] %v81_v22  ;;  %v85_v23 = vld [vmem:[%s84_s12] sm:$0x1]  ;;  %v158_v39 = vld [vmem:[#allocation3 + $0x68] sm:$0xff]  ;;  %s511_s15 = smov [#allocation13]  }
  0x60   :  { %86 = vst [vmem:[#allocation2 + $0x7] sm:$0x1] %v85_v23  ;;  %v121_v24 = vld [vmem:[%s120_s13] sm:$0x1]  ;;  %v374_v40 = vpack.c.bf16 %v158_v39, %v157_v38  ;;  %s251_s16 = sshll.u32 %s511_s15, 4  ;;  %s252_s16 = int_to_ptr.vmem [resolvable:$true] %s251_s16 }
  0x61   :  { %351 = vmatprep.subr.bf16.mxu0 %v350_v18  ;;  %122 = vst [vmem:[#allocation2 + $0x8] sm:$0x1] %v121_v24  ;;  %v151_v29 = vld [vmem:[#allocation3 + $0x30] sm:$0xff]  ;;  %s472_s18 = scalar_lea.vmem %s252_s16, 256  ;;  %p477_p2 = scmp.lt.s32.totalorder %s252_s16, %s252_s16 }
  0x62   :  { %353 = vmatpush3.bf16.xpose.msra.mxu0 %v350_v18  ;;  %v362_v31 = vpack.c.bf16 %v152_v30, %v151_v29  ;;  %v155_v35 = vld [vmem:[#allocation3 + $0x50] sm:$0xff]  ;;  %p473_p1 = scmp.ne.s32.totalorder %s252_s16, %s472_s18  ;;  %p478_p3 = scmp.lt.s32.totalorder %s472_s18, %s472_s18 }
  0x63   :  { %355 = vmatprep.subr.bf16.mxu0 %v354_v19  ;;  %v370_v37 = vpack.c.bf16 %v156_v36, %v155_v35  ;;  %v159_v41 = vld [vmem:[#allocation3 + $0x70] sm:$0xff] }
  0x64   :  { %v378_v43 = vpack.c.bf16 %v160_v42, %v159_v41  ;;  %p479_p4 = por %p478_p3, %p477_p2 }
  0x66   :  { %p480_p5 = pnand %p479_p4, %p473_p1 }
  0x67   :  { %v143_v28 = vld [vmem:[#allocation2] sm:$0xff] }
  0x68   :  { %347 = vmatprep.mubr.f32.mxu0 %v143_v28  ;;  %v144_v44 = vld [vmem:[#allocation2 + $0x8] sm:$0xff] }
  0x6a   :  { %357 = vmatpush3.bf16.xpose.msra.mxu0 %v354_v19 }
  0x6b   :  { %359 = vmatprep.subr.bf16.mxu0 %v358_v27 }
  0x72   :  { %361 = vmatpush3.bf16.xpose.msra.mxu0 %v358_v27 }
  0x73   :  { %363 = vmatprep.subr.bf16.mxu0 %v362_v31 }
  0x7a   :  { %365 = vmatpush3.bf16.xpose.msra.mxu0 %v362_v31 }
  0x7b   :  { %367 = vmatprep.subr.bf16.mxu0 %v366_v34 }
  0x82   :  { %369 = vmatpush3.bf16.xpose.msra.mxu0 %v366_v34 }
  0x83   :  { %371 = vmatprep.subr.bf16.mxu0 %v370_v37 }
  0x8a   :  { %373 = vmatpush3.bf16.xpose.msra.mxu0 %v370_v37 }
  0x8b   :  { %375 = vmatprep.subr.bf16.mxu0 %v374_v40 }
  0x92   :  { %377 = vmatpush3.bf16.xpose.msra.mxu0 %v374_v40 }
  0x93   :  { %379 = vmatprep.subr.bf16.mxu0 %v378_v43 }
  0x9a   :  { %381 = vmatpush3.bf16.xpose.msra.mxu0 %v378_v43 }
  0xa1   :  { %348 = vmatmul.mubr.f32.vlgmr.msra.gmra.mrb[0].mxu0 %v144_v44 }
 0x174   :  { %v349_v45 = vpop.f32.mrb[0].mxu0 }
 0x175   :  { %v227_v46 = vpop.f32.mrb[1].mxu0  ;;  %237 = vrot.lane.b32.xlu0 %v349_v45, %s510_s14 }
 0x1e7   :  { %v238_v47 = vpop.permute.xlu0 %237 }
 0x1e8   :  { %382 = vpush %v238_v47 }
 0x219   :  { %s383_s17 = spop %382 }
 0x21a   :  { %v240_v48 = vstv %s383_s17 }
 0x21b   :  { %v242_v49 = vadd.f32 %v240_v48, %v227_v46  ;;  %v243_v50 = vadd.f32 %v349_v45, %v240_v48 }
 0x21d   :  { %244 = vst [vmem:[#allocation13] sm:$0xff] %v242_v49  ;;  %245 = vst [vmem:[#allocation13 + $0x8] sm:$0xff] %v243_v50 }
 0x21e   :  { %483 = shalt.err (!%p480_p5)
}
 0x21f   :  { %s484_s23 = scalar_lea.hbm %s626_s5, 256 }
 0x220   :  { %p485_p6 = scmp.ne.s32.totalorder %s626_s5, %s484_s23  ;;  %p488_p7 = scmp.lt.u32.totalorder %s484_s23, %s626_s5 }
 0x222   :  { %p490_p8 = pnand %p488_p7, %p485_p6 }
 0x224   :  { %493 = shalt.err (!%p490_p8)
}
 0x225   :  { %257 = dma.vmem_to_hbm [thread:$0]  %s252_s16, 256, %s626_s5, [#allocation10], %s506_s20, %s506_s20, %s507_s21  }
 0x226   :  { %500 = dma.done.wait [#allocation10], 256  }
 0x227   :  { %501 = vsyncadd [#allocation10], 4294967040 }
 0x228   :  { %261 = vsyncpa [#allocation9], 1 }
 0x229   :  { %262 = vsyncpa [#allocation12], 1 }
 0x22a   :  { %263 = vsyncpa [#allocation10], 1 }

</bundles_post_ra>
